<compile_context>
chip_gen: v6e
topology: v6e:2x2x1
jax: 0.10.0
libtpu: 0.0.40
codegen_flags: <defaults>
</compile_context>

<pallas_src>
import jax
import jax.numpy as jnp
from jax.experimental import pallas as pl
from jax.experimental.pallas import tpu as pltpu


def _bcast_mul_kernel(s_ref, x_ref, o_ref):
    # s_ref: (tc, 1), x_ref: (tc, HW) -> single lane-broadcast + VPU multiply.
    s = s_ref[...]                      # hoisted once per grid step
    o_ref[...] = x_ref[...] * s


def _min_grid_steps_for_chip():
    """Best-effort: use 2 parallel steps on v7x (2 TensorCores/chip), else 1."""
    try:
        kind = (getattr(jax.devices()[0], "device_kind", "") or "").lower()
    except Exception:
        kind = ""
    return 2 if "v7" in kind else 1


def channel_scale_mul(scale_nc11, x_nchw, *, vmem_budget_bytes=8 << 20,
                      min_grid_steps=None):
    """Computes scale * x with scale (N, C, 1, 1) and x (N, C, H, W)."""
    N, C, H, W = x_nchw.shape
    assert scale_nc11.shape == (N, C, 1, 1)
    NC = N * C
    HW = H * W

    x2d = x_nchw.reshape(NC, HW)
    s2d = scale_nc11.reshape(NC, 1)

    if min_grid_steps is None:
        min_grid_steps = _min_grid_steps_for_chip()

    # How many rows fit in the VMEM budget (input + output block, with the
    # pipeline's double buffering already folded into the budget margin).
    bytes_per_row = 2 * HW * x2d.dtype.itemsize
    rows_fit = max(8, vmem_budget_bytes // max(1, bytes_per_row))
    target_steps = max(int(min_grid_steps), pl.cdiv(NC, int(rows_fit)))

    if target_steps <= 1:
        tc = NC                                  # one block == full array dims
    else:
        # 8-aligned row tile (sublane constraint); partial tail block is fine.
        tc = min(NC, ((pl.cdiv(NC, target_steps) + 7) // 8) * 8)
    grid = (pl.cdiv(NC, tc),)

    out2d = pl.pallas_call(
        _bcast_mul_kernel,
        out_shape=jax.ShapeDtypeStruct((NC, HW), x2d.dtype),
        grid_spec=pltpu.PrefetchScalarGridSpec(
            num_scalar_prefetch=0,
            grid=grid,
            in_specs=[
                pl.BlockSpec((tc, 1), lambda i: (i, 0)),
                pl.BlockSpec((tc, HW), lambda i: (i, 0)),
            ],
            out_specs=pl.BlockSpec((tc, HW), lambda i: (i, 0)),
        ),
        compiler_params=pltpu.CompilerParams(
            dimension_semantics=("parallel",),
        ),
    )(s2d, x2d)

    return out2d.reshape(N, C, H, W)


if __name__ == "__main__":
    key = jax.random.PRNGKey(0)
    k1, k2 = jax.random.split(key)

    # Small shapes consistent with the module (original: (1,2304,7,7)*(1,2304,1,1));
    # keep the 7x7 spatial extent, exercise N>1 batch folding.
    N, C, H, W = 2, 192, 7, 7
    x721 = jax.random.normal(k1, (N, C, H, W), dtype=jnp.float32)
    x726 = jax.random.normal(k2, (N, C, 1, 1), dtype=jnp.float32)

    out = channel_scale_mul(x726, x721)
    out = jax.block_until_ready(out)

    ref = x726 * x721
    assert out.shape == ref.shape
    assert jnp.allclose(out, ref, atol=1e-6, rtol=1e-6)
    print("KERNEL_OK")
</pallas_src>

<mosaic_0001>
module attributes {stable_mosaic.version = 11 : i64} {
  func.func @_bcast_mul_kernel(%arg0: i32, %arg1: memref<384x1xf32, #tpu.memory_space<vmem>>, %arg2: memref<384x49xf32, #tpu.memory_space<vmem>>, %arg3: memref<384x49xf32, #tpu.memory_space<vmem>>) attributes {dimension_semantics = [#tpu.dimension_semantics<parallel>], iteration_bounds = array<i64: 1>, scalar_prefetch = 0 : i64, scratch_operands = 0 : i64, tpu.core_type = #tpu.core_type<tc>, window_params = [{transform_indices = @transform_0, window_bounds = array<i64: 384, 1>}, {transform_indices = @transform_1, window_bounds = array<i64: 384, 49>}, {transform_indices = @transform_2, window_bounds = array<i64: 384, 49>}]} {
    %c0 = arith.constant 0 : index
    %c0_0 = arith.constant 0 : index
    %0 = vector.load %arg1[%c0, %c0_0] : memref<384x1xf32, #tpu.memory_space<vmem>>, vector<384x1xf32>
    %c0_1 = arith.constant 0 : index
    %c0_2 = arith.constant 0 : index
    %1 = vector.load %arg2[%c0_1, %c0_2] : memref<384x49xf32, #tpu.memory_space<vmem>>, vector<384x49xf32>
    %2 = vector.broadcast %0 : vector<384x1xf32> to vector<384x49xf32>
    %3 = arith.mulf %1, %2 : vector<384x49xf32>
    %c0_3 = arith.constant 0 : index
    %c0_4 = arith.constant 0 : index
    %4 = vector.load %arg3[%c0_3, %c0_4] : memref<384x49xf32, #tpu.memory_space<vmem>>, vector<384x49xf32>
    tpu.vector_store %arg3[%c0_3, %c0_4], %3 {strides = array<i32>} : memref<384x49xf32, #tpu.memory_space<vmem>>, vector<384x49xf32>,
    return
  }
  func.func @transform_0(%arg0: i32) -> (i32, i32) {
    %c0_i32 = arith.constant 0 : i32
    %c0_i32_0 = arith.constant 0 : i32
    return %arg0, %c0_i32 : i32, i32
  }
  func.func @transform_1(%arg0: i32) -> (i32, i32) {
    %c0_i32 = arith.constant 0 : i32
    %c0_i32_0 = arith.constant 0 : i32
    return %arg0, %c0_i32 : i32, i32
  }
  func.func @transform_2(%arg0: i32) -> (i32, i32) {
    %c0_i32 = arith.constant 0 : i32
    %c0_i32_0 = arith.constant 0 : i32
    return %arg0, %c0_i32 : i32, i32
  }
}

</mosaic_0001>

<bundles_post_ra>
// kernel: tpu_custom_call.1
= control target key start
LH: loop header
LB: loop body
LE: loop exit
PB: predicated region body
PF: predicated region fallthrough
CT: control target
= control target key end

     0   :  { %v451_v0 = vmov 0   ;;  %vm395_vm0 = vcmask 400384   ;;  %s947_s0 = inlined_call_operand.vmem [shape: f32[384,1], index: 0, kind: input, shape index: {}]   ;;  %s948_s1 = inlined_call_operand.vmem [shape: f32[384,49], index: 1, kind: input, shape index: {}]   ;;  %s949_s2 = inlined_call_operand.vmem [shape: f32[384,49], index: 2, kind: output, shape index: {}]  }
   0x1   :  { %450 = vset.pattern.permute.xlu1 %v451_v0  ;;  %449 = vset.pattern.permute.xlu0 %v451_v0  ;;  %v13_v1 = vld [vmem:[%s947_s0 + $0x10] sm:$0xff]  ;;  %v11_v2 = vld [vmem:[%s947_s0] sm:$0xff]  ;;  %v14_v3 = vld [vmem:[%s947_s0 + $0x18] sm:$0xff] }
   0x2   :  { %119 = vperm.xlu1 %450, %v13_v1   ;;  %109 = vperm.xlu0 %449, %v11_v2   ;;  %v12_v4 = vld [vmem:[%s947_s0 + $0x8] sm:$0xff]  ;;  %v15_v6 = vld [vmem:[%s947_s0 + $0x20] sm:$0xff]  ;;  %v18_v7 = vld [vmem:[%s947_s0 + $0x38] sm:$0xff] }
   0x3   :  { %v16_v5 = vld [vmem:[%s947_s0 + $0x28] sm:$0xff]  ;;  %v17_v8 = vld [vmem:[%s947_s0 + $0x30] sm:$0xff]  ;;  %v19_v10 = vld [vmem:[%s947_s0 + $0x40] sm:$0xff] }
   0x4   :  { %v20_v9 = vld [vmem:[%s947_s0 + $0x48] sm:$0xff]  ;;  %v22_v11 = vld [vmem:[%s947_s0 + $0x58] sm:$0xff]  ;;  %v21_v12 = vld [vmem:[%s947_s0 + $0x50] sm:$0xff] }
   0x5   :  { %v24_v13 = vld [vmem:[%s947_s0 + $0x68] sm:$0xff]  ;;  %v23_v14 = vld [vmem:[%s947_s0 + $0x60] sm:$0xff]  ;;  %v26_v15 = vld [vmem:[%s947_s0 + $0x78] sm:$0xff] }
   0x6   :  { %124 = vperm.xlu1 %450, %v14_v3   ;;  %114 = vperm.xlu0 %449, %v12_v4   ;;  %v25_v16 = vld [vmem:[%s947_s0 + $0x70] sm:$0xff]  ;;  %v28_v17 = vld [vmem:[%s947_s0 + $0x88] sm:$0xff]  ;;  %v27_v18 = vld [vmem:[%s947_s0 + $0x80] sm:$0xff] }
   0x7   :  { %v30_v19 = vld [vmem:[%s947_s0 + $0x98] sm:$0xff]  ;;  %v29_v20 = vld [vmem:[%s947_s0 + $0x90] sm:$0xff]  ;;  %v32_v21 = vld [vmem:[%s947_s0 + $0xa8] sm:$0xff] }
   0x8   :  { %v31_v22 = vld [vmem:[%s947_s0 + $0xa0] sm:$0xff]  ;;  %v34_v23 = vld [vmem:[%s947_s0 + $0xb8] sm:$0xff]  ;;  %v33_v24 = vld [vmem:[%s947_s0 + $0xb0] sm:$0xff] }
   0x9   :  { %v36_v25 = vld [vmem:[%s947_s0 + $0xc8] sm:$0xff]  ;;  %v35_v26 = vld [vmem:[%s947_s0 + $0xc0] sm:$0xff]  ;;  %v38_v27 = vld [vmem:[%s947_s0 + $0xd8] sm:$0xff] }
   0xa   :  { %134 = vperm.xlu1 %450, %v16_v5   ;;  %129 = vperm.xlu0 %449, %v15_v6   ;;  %v37_v28 = vld [vmem:[%s947_s0 + $0xd0] sm:$0xff]  ;;  %v40_v29 = vld [vmem:[%s947_s0 + $0xe8] sm:$0xff]  ;;  %v39_v30 = vld [vmem:[%s947_s0 + $0xe0] sm:$0xff] }
   0xb   :  { %v42_v31 = vld [vmem:[%s947_s0 + $0xf8] sm:$0xff]  ;;  %v41_v32 = vld [vmem:[%s947_s0 + $0xf0] sm:$0xff]  ;;  %v44_v33 = vld [vmem:[%s947_s0 + $0x108] sm:$0xff] }
   0xc   :  { %v43_v34 = vld [vmem:[%s947_s0 + $0x100] sm:$0xff]  ;;  %v46_v35 = vld [vmem:[%s947_s0 + $0x118] sm:$0xff]  ;;  %v45_v36 = vld [vmem:[%s947_s0 + $0x110] sm:$0xff] }
   0xd   :  { %v48_v37 = vld [vmem:[%s947_s0 + $0x128] sm:$0xff]  ;;  %v47_v38 = vld [vmem:[%s947_s0 + $0x120] sm:$0xff]  ;;  %v50_v39 = vld [vmem:[%s947_s0 + $0x138] sm:$0xff] }
   0xe   :  { %144 = vperm.xlu1 %450, %v18_v7   ;;  %139 = vperm.xlu0 %449, %v17_v8   ;;  %v49_v40 = vld [vmem:[%s947_s0 + $0x130] sm:$0xff]  ;;  %v52_v41 = vld [vmem:[%s947_s0 + $0x148] sm:$0xff]  ;;  %v51_v42 = vld [vmem:[%s947_s0 + $0x140] sm:$0xff] }
   0xf   :  { %v54_v43 = vld [vmem:[%s947_s0 + $0x158] sm:$0xff]  ;;  %v53_v44 = vld [vmem:[%s947_s0 + $0x150] sm:$0xff]  ;;  %v56_v45 = vld [vmem:[%s947_s0 + $0x168] sm:$0xff] }
  0x10   :  { %v55_v46 = vld [vmem:[%s947_s0 + $0x160] sm:$0xff]  ;;  %v58_v47 = vld [vmem:[%s947_s0 + $0x178] sm:$0xff]  ;;  %v57_v48 = vld [vmem:[%s947_s0 + $0x170] sm:$0xff] }
  0x11   :  { %v61_v49 = vld [vmem:[%s948_s1 + $0x10] sm:$0xff]  ;;  %v59_v50 = vld [vmem:[%s948_s1] sm:$0xff]  ;;  %v62_v55 = vld [vmem:[%s948_s1 + $0x18] sm:$0xff] }
  0x12   :  { %154 = vperm.xlu1 %450, %v20_v9   ;;  %149 = vperm.xlu0 %449, %v19_v10   ;;  %v60_v56 = vld [vmem:[%s948_s1 + $0x8] sm:$0xff]  ;;  %v63_v62 = vld [vmem:[%s948_s1 + $0x20] sm:$0xff]  ;;  %v66_v3 = vld [vmem:[%s948_s1 + $0x38] sm:$0xff] }
  0x13   :  { %v64_v61 = vld [vmem:[%s948_s1 + $0x28] sm:$0xff]  ;;  %v65_v4 = vld [vmem:[%s948_s1 + $0x30] sm:$0xff]  ;;  %v67_v10 = vld [vmem:[%s948_s1 + $0x40] sm:$0xff] }
  0x14   :  { %v68_v9 = vld [vmem:[%s948_s1 + $0x48] sm:$0xff] }
  0x16   :  { %164 = vperm.xlu1 %450, %v22_v11   ;;  %159 = vperm.xlu0 %449, %v21_v12  }
  0x1a   :  { %174 = vperm.xlu1 %450, %v24_v13   ;;  %169 = vperm.xlu0 %449, %v23_v14  }
  0x1e   :  { %184 = vperm.xlu1 %450, %v26_v15   ;;  %179 = vperm.xlu0 %449, %v25_v16   ;;  %v70_v15 = vld [vmem:[%s948_s1 + $0x58] sm:$0xff]  ;;  %v69_v16 = vld [vmem:[%s948_s1 + $0x50] sm:$0xff] }
  0x22   :  { %194 = vperm.xlu1 %450, %v28_v17   ;;  %189 = vperm.xlu0 %449, %v27_v18  }
  0x26   :  { %204 = vperm.xlu1 %450, %v30_v19   ;;  %199 = vperm.xlu0 %449, %v29_v20  }
  0x2a   :  { %214 = vperm.xlu1 %450, %v32_v21   ;;  %209 = vperm.xlu0 %449, %v31_v22   ;;  %v72_v21 = vld [vmem:[%s948_s1 + $0x68] sm:$0xff]  ;;  %v71_v22 = vld [vmem:[%s948_s1 + $0x60] sm:$0xff] }
  0x2e   :  { %224 = vperm.xlu1 %450, %v34_v23   ;;  %219 = vperm.xlu0 %449, %v33_v24  }
  0x32   :  { %234 = vperm.xlu1 %450, %v36_v25   ;;  %229 = vperm.xlu0 %449, %v35_v26  }
  0x36   :  { %244 = vperm.xlu1 %450, %v38_v27   ;;  %239 = vperm.xlu0 %449, %v37_v28   ;;  %v74_v27 = vld [vmem:[%s948_s1 + $0x78] sm:$0xff]  ;;  %v73_v28 = vld [vmem:[%s948_s1 + $0x70] sm:$0xff] }
  0x3a   :  { %254 = vperm.xlu1 %450, %v40_v29   ;;  %249 = vperm.xlu0 %449, %v39_v30  }
  0x3e   :  { %264 = vperm.xlu1 %450, %v42_v31   ;;  %259 = vperm.xlu0 %449, %v41_v32  }
  0x42   :  { %274 = vperm.xlu1 %450, %v44_v33   ;;  %269 = vperm.xlu0 %449, %v43_v34   ;;  %v76_v33 = vld [vmem:[%s948_s1 + $0x88] sm:$0xff]  ;;  %v75_v34 = vld [vmem:[%s948_s1 + $0x80] sm:$0xff] }
  0x46   :  { %284 = vperm.xlu1 %450, %v46_v35   ;;  %279 = vperm.xlu0 %449, %v45_v36  }
  0x4a   :  { %294 = vperm.xlu1 %450, %v48_v37   ;;  %289 = vperm.xlu0 %449, %v47_v38  }
  0x4e   :  { %304 = vperm.xlu1 %450, %v50_v39   ;;  %299 = vperm.xlu0 %449, %v49_v40   ;;  %v78_v39 = vld [vmem:[%s948_s1 + $0x98] sm:$0xff]  ;;  %v77_v40 = vld [vmem:[%s948_s1 + $0x90] sm:$0xff] }
  0x52   :  { %314 = vperm.xlu1 %450, %v52_v41   ;;  %309 = vperm.xlu0 %449, %v51_v42  }
  0x56   :  { %324 = vperm.xlu1 %450, %v54_v43   ;;  %319 = vperm.xlu0 %449, %v53_v44  }
  0x5a   :  { %334 = vperm.xlu1 %450, %v56_v45   ;;  %329 = vperm.xlu0 %449, %v55_v46   ;;  %v80_v45 = vld [vmem:[%s948_s1 + $0xa8] sm:$0xff]  ;;  %v79_v46 = vld [vmem:[%s948_s1 + $0xa0] sm:$0xff] }
  0x5e   :  { %344 = vperm.xlu1 %450, %v58_v47   ;;  %339 = vperm.xlu0 %449, %v57_v48  }
  0x7d   :  { %v120_v51 = vpop.permute.xlu1 %119  ;;  %v110_v52 = vpop.permute.xlu0 %109 }
  0x7e   :  { %v349_v53 = vmul.f32 %v120_v51, %v61_v49  ;;  %v347_v54 = vmul.f32 %v110_v52, %v59_v50  ;;  %v82_v51 = vld [vmem:[%s948_s1 + $0xb8] sm:$0xff]  ;;  %v81_v52 = vld [vmem:[%s948_s1 + $0xb0] sm:$0xff] }
  0x80   :  { %398 = vst.msk [vmem:[%s949_s2 + $0x10] sm:$0xff] %vm395_vm0, %v349_v53  ;;  %396 = vst.msk [vmem:[%s949_s2] sm:$0xff] %vm395_vm0, %v347_v54 }
  0x81   :  { %v125_v57 = vpop.permute.xlu1 %124  ;;  %v115_v58 = vpop.permute.xlu0 %114 }
  0x82   :  { %v350_v59 = vmul.f32 %v125_v57, %v62_v55  ;;  %v348_v60 = vmul.f32 %v115_v58, %v60_v56  ;;  %v84_v57 = vld [vmem:[%s948_s1 + $0xc8] sm:$0xff]  ;;  %v83_v58 = vld [vmem:[%s948_s1 + $0xc0] sm:$0xff] }
  0x84   :  { %399 = vst.msk [vmem:[%s949_s2 + $0x18] sm:$0xff] %vm395_vm0, %v350_v59  ;;  %397 = vst.msk [vmem:[%s949_s2 + $0x8] sm:$0xff] %vm395_vm0, %v348_v60 }
  0x85   :  { %v135_v63 = vpop.permute.xlu1 %134  ;;  %v130_v0 = vpop.permute.xlu0 %129 }
  0x86   :  { %v352_v1 = vmul.f32 %v135_v63, %v64_v61  ;;  %v351_v2 = vmul.f32 %v130_v0, %v63_v62  ;;  %v86_v63 = vld [vmem:[%s948_s1 + $0xd8] sm:$0xff]  ;;  %v85_v0 = vld [vmem:[%s948_s1 + $0xd0] sm:$0xff] }
  0x88   :  { %401 = vst.msk [vmem:[%s949_s2 + $0x28] sm:$0xff] %vm395_vm0, %v352_v1  ;;  %400 = vst.msk [vmem:[%s949_s2 + $0x20] sm:$0xff] %vm395_vm0, %v351_v2 }
  0x89   :  { %v145_v5 = vpop.permute.xlu1 %144  ;;  %v140_v6 = vpop.permute.xlu0 %139 }
  0x8a   :  { %v354_v7 = vmul.f32 %v145_v5, %v66_v3  ;;  %v353_v8 = vmul.f32 %v140_v6, %v65_v4  ;;  %v88_v5 = vld [vmem:[%s948_s1 + $0xe8] sm:$0xff]  ;;  %v87_v6 = vld [vmem:[%s948_s1 + $0xe0] sm:$0xff] }
  0x8c   :  { %403 = vst.msk [vmem:[%s949_s2 + $0x38] sm:$0xff] %vm395_vm0, %v354_v7  ;;  %402 = vst.msk [vmem:[%s949_s2 + $0x30] sm:$0xff] %vm395_vm0, %v353_v8 }
  0x8d   :  { %v155_v11 = vpop.permute.xlu1 %154  ;;  %v150_v12 = vpop.permute.xlu0 %149 }
  0x8e   :  { %v356_v13 = vmul.f32 %v155_v11, %v68_v9  ;;  %v355_v14 = vmul.f32 %v150_v12, %v67_v10  ;;  %v90_v11 = vld [vmem:[%s948_s1 + $0xf8] sm:$0xff]  ;;  %v89_v12 = vld [vmem:[%s948_s1 + $0xf0] sm:$0xff] }
  0x90   :  { %405 = vst.msk [vmem:[%s949_s2 + $0x48] sm:$0xff] %vm395_vm0, %v356_v13  ;;  %404 = vst.msk [vmem:[%s949_s2 + $0x40] sm:$0xff] %vm395_vm0, %v355_v14 }
  0x91   :  { %v165_v17 = vpop.permute.xlu1 %164  ;;  %v160_v18 = vpop.permute.xlu0 %159 }
  0x92   :  { %v358_v19 = vmul.f32 %v165_v17, %v70_v15  ;;  %v357_v20 = vmul.f32 %v160_v18, %v69_v16  ;;  %v92_v17 = vld [vmem:[%s948_s1 + $0x108] sm:$0xff]  ;;  %v91_v18 = vld [vmem:[%s948_s1 + $0x100] sm:$0xff] }
  0x94   :  { %407 = vst.msk [vmem:[%s949_s2 + $0x58] sm:$0xff] %vm395_vm0, %v358_v19  ;;  %406 = vst.msk [vmem:[%s949_s2 + $0x50] sm:$0xff] %vm395_vm0, %v357_v20 }
  0x95   :  { %v175_v23 = vpop.permute.xlu1 %174  ;;  %v170_v24 = vpop.permute.xlu0 %169 }
  0x96   :  { %v360_v25 = vmul.f32 %v175_v23, %v72_v21  ;;  %v359_v26 = vmul.f32 %v170_v24, %v71_v22  ;;  %v94_v23 = vld [vmem:[%s948_s1 + $0x118] sm:$0xff]  ;;  %v93_v24 = vld [vmem:[%s948_s1 + $0x110] sm:$0xff] }
  0x98   :  { %409 = vst.msk [vmem:[%s949_s2 + $0x68] sm:$0xff] %vm395_vm0, %v360_v25  ;;  %408 = vst.msk [vmem:[%s949_s2 + $0x60] sm:$0xff] %vm395_vm0, %v359_v26 }
  0x99   :  { %v185_v29 = vpop.permute.xlu1 %184  ;;  %v180_v30 = vpop.permute.xlu0 %179 }
  0x9a   :  { %v362_v31 = vmul.f32 %v185_v29, %v74_v27  ;;  %v361_v32 = vmul.f32 %v180_v30, %v73_v28  ;;  %v96_v29 = vld [vmem:[%s948_s1 + $0x128] sm:$0xff]  ;;  %v95_v30 = vld [vmem:[%s948_s1 + $0x120] sm:$0xff] }
  0x9c   :  { %411 = vst.msk [vmem:[%s949_s2 + $0x78] sm:$0xff] %vm395_vm0, %v362_v31  ;;  %410 = vst.msk [vmem:[%s949_s2 + $0x70] sm:$0xff] %vm395_vm0, %v361_v32 }
  0x9d   :  { %v195_v35 = vpop.permute.xlu1 %194  ;;  %v190_v36 = vpop.permute.xlu0 %189 }
  0x9e   :  { %v364_v37 = vmul.f32 %v195_v35, %v76_v33  ;;  %v363_v38 = vmul.f32 %v190_v36, %v75_v34  ;;  %v98_v35 = vld [vmem:[%s948_s1 + $0x138] sm:$0xff]  ;;  %v97_v36 = vld [vmem:[%s948_s1 + $0x130] sm:$0xff] }
  0xa0   :  { %413 = vst.msk [vmem:[%s949_s2 + $0x88] sm:$0xff] %vm395_vm0, %v364_v37  ;;  %412 = vst.msk [vmem:[%s949_s2 + $0x80] sm:$0xff] %vm395_vm0, %v363_v38 }
  0xa1   :  { %v205_v41 = vpop.permute.xlu1 %204  ;;  %v200_v42 = vpop.permute.xlu0 %199 }
  0xa2   :  { %v366_v43 = vmul.f32 %v205_v41, %v78_v39  ;;  %v365_v44 = vmul.f32 %v200_v42, %v77_v40  ;;  %v100_v41 = vld [vmem:[%s948_s1 + $0x148] sm:$0xff]  ;;  %v99_v42 = vld [vmem:[%s948_s1 + $0x140] sm:$0xff] }
  0xa4   :  { %415 = vst.msk [vmem:[%s949_s2 + $0x98] sm:$0xff] %vm395_vm0, %v366_v43  ;;  %414 = vst.msk [vmem:[%s949_s2 + $0x90] sm:$0xff] %vm395_vm0, %v365_v44 }
  0xa5   :  { %v215_v47 = vpop.permute.xlu1 %214  ;;  %v210_v48 = vpop.permute.xlu0 %209 }
  0xa6   :  { %v368_v49 = vmul.f32 %v215_v47, %v80_v45  ;;  %v367_v50 = vmul.f32 %v210_v48, %v79_v46  ;;  %v102_v47 = vld [vmem:[%s948_s1 + $0x158] sm:$0xff]  ;;  %v101_v48 = vld [vmem:[%s948_s1 + $0x150] sm:$0xff] }
  0xa8   :  { %417 = vst.msk [vmem:[%s949_s2 + $0xa8] sm:$0xff] %vm395_vm0, %v368_v49  ;;  %416 = vst.msk [vmem:[%s949_s2 + $0xa0] sm:$0xff] %vm395_vm0, %v367_v50 }
  0xa9   :  { %v225_v53 = vpop.permute.xlu1 %224  ;;  %v220_v54 = vpop.permute.xlu0 %219 }
  0xaa   :  { %v370_v55 = vmul.f32 %v225_v53, %v82_v51  ;;  %v369_v56 = vmul.f32 %v220_v54, %v81_v52  ;;  %v104_v53 = vld [vmem:[%s948_s1 + $0x168] sm:$0xff]  ;;  %v103_v54 = vld [vmem:[%s948_s1 + $0x160] sm:$0xff] }
  0xac   :  { %419 = vst.msk [vmem:[%s949_s2 + $0xb8] sm:$0xff] %vm395_vm0, %v370_v55  ;;  %418 = vst.msk [vmem:[%s949_s2 + $0xb0] sm:$0xff] %vm395_vm0, %v369_v56 }
  0xad   :  { %v235_v59 = vpop.permute.xlu1 %234  ;;  %v230_v60 = vpop.permute.xlu0 %229 }
  0xae   :  { %v372_v61 = vmul.f32 %v235_v59, %v84_v57  ;;  %v371_v62 = vmul.f32 %v230_v60, %v83_v58  ;;  %v106_v59 = vld [vmem:[%s948_s1 + $0x178] sm:$0xff]  ;;  %v105_v60 = vld [vmem:[%s948_s1 + $0x170] sm:$0xff] }
  0xb0   :  { %421 = vst.msk [vmem:[%s949_s2 + $0xc8] sm:$0xff] %vm395_vm0, %v372_v61  ;;  %420 = vst.msk [vmem:[%s949_s2 + $0xc0] sm:$0xff] %vm395_vm0, %v371_v62 }
  0xb1   :  { %v245_v1 = vpop.permute.xlu1 %244  ;;  %v240_v2 = vpop.permute.xlu0 %239 }
  0xb2   :  { %v374_v3 = vmul.f32 %v245_v1, %v86_v63  ;;  %v373_v4 = vmul.f32 %v240_v2, %v85_v0 }
  0xb4   :  { %423 = vst.msk [vmem:[%s949_s2 + $0xd8] sm:$0xff] %vm395_vm0, %v374_v3  ;;  %422 = vst.msk [vmem:[%s949_s2 + $0xd0] sm:$0xff] %vm395_vm0, %v373_v4 }
  0xb5   :  { %v255_v7 = vpop.permute.xlu1 %254  ;;  %v250_v8 = vpop.permute.xlu0 %249 }
  0xb6   :  { %v376_v9 = vmul.f32 %v255_v7, %v88_v5  ;;  %v375_v10 = vmul.f32 %v250_v8, %v87_v6 }
  0xb8   :  { %425 = vst.msk [vmem:[%s949_s2 + $0xe8] sm:$0xff] %vm395_vm0, %v376_v9  ;;  %424 = vst.msk [vmem:[%s949_s2 + $0xe0] sm:$0xff] %vm395_vm0, %v375_v10 }
  0xb9   :  { %v265_v13 = vpop.permute.xlu1 %264  ;;  %v260_v14 = vpop.permute.xlu0 %259 }
  0xba   :  { %v378_v15 = vmul.f32 %v265_v13, %v90_v11  ;;  %v377_v16 = vmul.f32 %v260_v14, %v89_v12 }
  0xbc   :  { %427 = vst.msk [vmem:[%s949_s2 + $0xf8] sm:$0xff] %vm395_vm0, %v378_v15  ;;  %426 = vst.msk [vmem:[%s949_s2 + $0xf0] sm:$0xff] %vm395_vm0, %v377_v16 }
  0xbd   :  { %v275_v19 = vpop.permute.xlu1 %274  ;;  %v270_v20 = vpop.permute.xlu0 %269 }
  0xbe   :  { %v380_v21 = vmul.f32 %v275_v19, %v92_v17  ;;  %v379_v22 = vmul.f32 %v270_v20, %v91_v18 }
  0xc0   :  { %429 = vst.msk [vmem:[%s949_s2 + $0x108] sm:$0xff] %vm395_vm0, %v380_v21  ;;  %428 = vst.msk [vmem:[%s949_s2 + $0x100] sm:$0xff] %vm395_vm0, %v379_v22 }
  0xc1   :  { %v285_v25 = vpop.permute.xlu1 %284  ;;  %v280_v26 = vpop.permute.xlu0 %279 }
  0xc2   :  { %v382_v27 = vmul.f32 %v285_v25, %v94_v23  ;;  %v381_v28 = vmul.f32 %v280_v26, %v93_v24 }
  0xc4   :  { %431 = vst.msk [vmem:[%s949_s2 + $0x118] sm:$0xff] %vm395_vm0, %v382_v27  ;;  %430 = vst.msk [vmem:[%s949_s2 + $0x110] sm:$0xff] %vm395_vm0, %v381_v28 }
  0xc5   :  { %v295_v31 = vpop.permute.xlu1 %294  ;;  %v290_v32 = vpop.permute.xlu0 %289 }
  0xc6   :  { %v384_v33 = vmul.f32 %v295_v31, %v96_v29  ;;  %v383_v34 = vmul.f32 %v290_v32, %v95_v30 }
  0xc8   :  { %433 = vst.msk [vmem:[%s949_s2 + $0x128] sm:$0xff] %vm395_vm0, %v384_v33  ;;  %432 = vst.msk [vmem:[%s949_s2 + $0x120] sm:$0xff] %vm395_vm0, %v383_v34 }
  0xc9   :  { %v305_v37 = vpop.permute.xlu1 %304  ;;  %v300_v38 = vpop.permute.xlu0 %299 }
  0xca   :  { %v386_v39 = vmul.f32 %v305_v37, %v98_v35  ;;  %v385_v40 = vmul.f32 %v300_v38, %v97_v36 }
  0xcc   :  { %435 = vst.msk [vmem:[%s949_s2 + $0x138] sm:$0xff] %vm395_vm0, %v386_v39  ;;  %434 = vst.msk [vmem:[%s949_s2 + $0x130] sm:$0xff] %vm395_vm0, %v385_v40 }
  0xcd   :  { %v315_v43 = vpop.permute.xlu1 %314  ;;  %v310_v44 = vpop.permute.xlu0 %309 }
  0xce   :  { %v388_v45 = vmul.f32 %v315_v43, %v100_v41  ;;  %v387_v46 = vmul.f32 %v310_v44, %v99_v42 }
  0xd0   :  { %437 = vst.msk [vmem:[%s949_s2 + $0x148] sm:$0xff] %vm395_vm0, %v388_v45  ;;  %436 = vst.msk [vmem:[%s949_s2 + $0x140] sm:$0xff] %vm395_vm0, %v387_v46 }
  0xd1   :  { %v325_v49 = vpop.permute.xlu1 %324  ;;  %v320_v50 = vpop.permute.xlu0 %319 }
  0xd2   :  { %v390_v51 = vmul.f32 %v325_v49, %v102_v47  ;;  %v389_v52 = vmul.f32 %v320_v50, %v101_v48 }
  0xd4   :  { %439 = vst.msk [vmem:[%s949_s2 + $0x158] sm:$0xff] %vm395_vm0, %v390_v51  ;;  %438 = vst.msk [vmem:[%s949_s2 + $0x150] sm:$0xff] %vm395_vm0, %v389_v52 }
  0xd5   :  { %v335_v55 = vpop.permute.xlu1 %334  ;;  %v330_v56 = vpop.permute.xlu0 %329 }
  0xd6   :  { %v392_v57 = vmul.f32 %v335_v55, %v104_v53  ;;  %v391_v58 = vmul.f32 %v330_v56, %v103_v54 }
  0xd8   :  { %441 = vst.msk [vmem:[%s949_s2 + $0x168] sm:$0xff] %vm395_vm0, %v392_v57  ;;  %440 = vst.msk [vmem:[%s949_s2 + $0x160] sm:$0xff] %vm395_vm0, %v391_v58 }
  0xd9   :  { %v345_v61 = vpop.permute.xlu1 %344  ;;  %v340_v62 = vpop.permute.xlu0 %339 }
  0xda   :  { %v394_v63 = vmul.f32 %v345_v61, %v106_v59  ;;  %v393_v0 = vmul.f32 %v340_v62, %v105_v60 }
  0xdc   :  { %443 = vst.msk [vmem:[%s949_s2 + $0x178] sm:$0xff] %vm395_vm0, %v394_v63  ;;  %442 = vst.msk [vmem:[%s949_s2 + $0x170] sm:$0xff] %vm395_vm0, %v393_v0 }

</bundles_post_ra>
